<compile_context>
chip_gen: v6e
topology: v6e:2x2x1
jax: 0.10.0
libtpu: 0.0.40
codegen_flags: <defaults>
</compile_context>

<pallas_src>
import functools

import jax
import jax.numpy as jnp
from jax.experimental import pallas as pl
from jax.experimental.pallas import tpu as pltpu

# --- Module hyperparameters (rows/cols undefined in the source; pick small) ---
ROWS, COLS = 4, 4
INPUT_SIZE = ROWS * COLS + 8          # 24
INPUT_PAD = 32                        # 24 -> 32 (sublane multiple of 8)
LAYER1 = 256
LAYER2 = 256
OUTPUT_SIZE = 3
OUTPUT_PAD = 128                      # 3 -> 128 (lane-dense output)
NEG_SLOPE = 0.01                      # F.leaky_relu default


def _round_up(n, m):
    return ((n + m - 1) // m) * m


def _leaky_relu(x):
    return jnp.where(x > 0, x, NEG_SLOPE * x)


def dqn_kernel(x_ref, w1_ref, b1_ref, w2_ref, b2_ref, w3_ref, b3_ref, o_ref):
    # Fused 3-layer MLP forward on one (tb, INPUT_PAD) batch tile.
    # bf16 MXU inputs, f32 accumulation, f32 elementwise (bias, leaky-ReLU).
    x = x_ref[...].astype(jnp.bfloat16)
    h1 = jnp.dot(x, w1_ref[...], preferred_element_type=jnp.float32) + b1_ref[...]
    h1 = _leaky_relu(h1)
    h2 = jnp.dot(h1.astype(jnp.bfloat16), w2_ref[...],
                 preferred_element_type=jnp.float32) + b2_ref[...]
    h2 = _leaky_relu(h2)
    out = jnp.dot(h2.astype(jnp.bfloat16), w3_ref[...],
                  preferred_element_type=jnp.float32) + b3_ref[...]
    o_ref[...] = out.astype(o_ref.dtype)


@functools.partial(jax.jit, static_argnames=("tb",))
def dqn_forward(x, prepared_params, tb=256):
    """x: (B, INPUT_SIZE) float32 -> (B, OUTPUT_SIZE) float32.

    prepared_params: output of prepare_params (padded, bf16 weights, f32 biases).
    """
    w1, b1, w2, b2, w3, b3 = prepared_params
    B = x.shape[0]

    # Batch tile: multiple of 8, capped (default 256). Pad B up to a multiple.
    tb = min(tb, _round_up(B, 8))
    b_pad = _round_up(B, tb)

    # Zero padding is inert through the MLP (zero feature columns, zero rows
    # are simply sliced away below).
    x_pad = jnp.pad(x, ((0, b_pad - B), (0, INPUT_PAD - INPUT_SIZE)))

    grid = (b_pad // tb,)

    flops = 2 * b_pad * (INPUT_PAD * LAYER1 + LAYER1 * LAYER2 + LAYER2 * OUTPUT_PAD)
    bytes_accessed = (
        x_pad.size * 4
        + w1.size * 2 + w2.size * 2 + w3.size * 2
        + b1.size * 4 + b2.size * 4 + b3.size * 4
        + b_pad * OUTPUT_PAD * 4
    )

    out = pl.pallas_call(
        dqn_kernel,
        out_shape=jax.ShapeDtypeStruct((b_pad, OUTPUT_PAD), jnp.float32),
        grid_spec=pltpu.PrefetchScalarGridSpec(
            num_scalar_prefetch=0,
            grid=grid,
            in_specs=[
                pl.BlockSpec((tb, INPUT_PAD), lambda i: (i, 0)),        # x tile
                pl.BlockSpec((INPUT_PAD, LAYER1), lambda i: (0, 0)),    # w1 (resident)
                pl.BlockSpec((1, LAYER1), lambda i: (0, 0)),            # b1
                pl.BlockSpec((LAYER1, LAYER2), lambda i: (0, 0)),       # w2
                pl.BlockSpec((1, LAYER2), lambda i: (0, 0)),            # b2
                pl.BlockSpec((LAYER2, OUTPUT_PAD), lambda i: (0, 0)),   # w3 (padded)
                pl.BlockSpec((1, OUTPUT_PAD), lambda i: (0, 0)),        # b3 (padded)
            ],
            out_specs=pl.BlockSpec((tb, OUTPUT_PAD), lambda i: (i, 0)),
        ),
        compiler_params=pltpu.CompilerParams(
            dimension_semantics=("parallel",),
        ),
        cost_estimate=pl.CostEstimate(
            flops=flops, transcendentals=0, bytes_accessed=bytes_accessed
        ),
    )(x_pad, w1, b1, w2, b2, w3, b3)

    # Drop batch padding and the zero-padded output lanes.
    return out[:B, :OUTPUT_SIZE]


def init_params(key):
    """Deterministic init mimicking nn.Linear's uniform(-1/sqrt(fan_in), 1/sqrt(fan_in)).

    Returns f32 params in (fan_in, fan_out) layout (transposed vs PyTorch).
    """
    keys = jax.random.split(key, 6)

    def linear(kw, kb, fan_in, fan_out):
        bound = 1.0 / jnp.sqrt(jnp.float32(fan_in))
        w = jax.random.uniform(kw, (fan_in, fan_out), jnp.float32, -bound, bound)
        b = jax.random.uniform(kb, (1, fan_out), jnp.float32, -bound, bound)
        return w, b

    w1, b1 = linear(keys[0], keys[1], INPUT_SIZE, LAYER1)
    w2, b2 = linear(keys[2], keys[3], LAYER1, LAYER2)
    w3, b3 = linear(keys[4], keys[5], LAYER2, OUTPUT_SIZE)
    return (w1, b1, w2, b2, w3, b3)


def prepare_params(params_f32):
    """Pad to kernel-friendly shapes and cast weights to bf16 (biases stay f32)."""
    w1, b1, w2, b2, w3, b3 = params_f32
    w1p = jnp.pad(w1, ((0, INPUT_PAD - INPUT_SIZE), (0, 0))).astype(jnp.bfloat16)
    w2p = w2.astype(jnp.bfloat16)
    w3p = jnp.pad(w3, ((0, 0), (0, OUTPUT_PAD - OUTPUT_SIZE))).astype(jnp.bfloat16)
    b3p = jnp.pad(b3, ((0, 0), (0, OUTPUT_PAD - OUTPUT_SIZE)))
    return (w1p, b1, w2p, b2, w3p, b3p)


def reference_forward_bf16(x, prepared_params):
    """jnp reference using identical dtypes/padding as the kernel."""
    w1, b1, w2, b2, w3, b3 = prepared_params
    xp = jnp.pad(x, ((0, 0), (0, INPUT_PAD - INPUT_SIZE))).astype(jnp.bfloat16)
    h1 = _leaky_relu(jnp.dot(xp, w1, preferred_element_type=jnp.float32) + b1)
    h2 = _leaky_relu(
        jnp.dot(h1.astype(jnp.bfloat16), w2, preferred_element_type=jnp.float32) + b2
    )
    out = jnp.dot(h2.astype(jnp.bfloat16), w3, preferred_element_type=jnp.float32) + b3
    return out[:, :OUTPUT_SIZE]


def reference_forward_f32(x, params_f32):
    """Pure-f32 reference matching the original PyTorch forward."""
    w1, b1, w2, b2, w3, b3 = params_f32
    h1 = _leaky_relu(x @ w1 + b1)
    h2 = _leaky_relu(h1 @ w2 + b2)
    return h2 @ w3 + b3


# TODO(synk): loss / load_params / save_params / copy from the PyTorch module are
# host-side utilities (MSE, torch.load/save, deepcopy), not forward-pass ops, so
# they are not translated to Pallas.

if __name__ == "__main__":
    key = jax.random.PRNGKey(0)
    k_x, k_p = jax.random.split(key)

    B = 8  # small per-env-step batch; wrapper handles any B via padding/tiling
    x = jax.random.normal(k_x, (B, INPUT_SIZE), jnp.float32)

    params_f32 = init_params(k_p)
    prepared = prepare_params(params_f32)

    out = dqn_forward(x, prepared)
    out = jax.block_until_ready(out)
    assert out.shape == (B, OUTPUT_SIZE), out.shape

    # Strict check vs an identically-typed (bf16-weight) jnp reference.
    ref_bf16 = reference_forward_bf16(x, prepared)
    assert jnp.allclose(out, ref_bf16, atol=1e-3, rtol=1e-3), "mismatch vs bf16 reference"

    # Loose sanity check vs the pure-f32 PyTorch-equivalent forward
    # (difference comes only from bf16 weight/activation rounding).
    ref_f32 = reference_forward_f32(x, params_f32)
    assert jnp.allclose(out, ref_f32, atol=5e-2, rtol=5e-2), "mismatch vs f32 reference"

    # Exercise the tiled path (B > tb multiple, non-multiple batch).
    B2 = 300
    x2 = jax.random.normal(jax.random.PRNGKey(1), (B2, INPUT_SIZE), jnp.float32)
    out2 = jax.block_until_ready(dqn_forward(x2, prepared))
    ref2 = reference_forward_bf16(x2, prepared)
    assert out2.shape == (B2, OUTPUT_SIZE), out2.shape
    assert jnp.allclose(out2, ref2, atol=1e-3, rtol=1e-3), "mismatch on tiled batch"

    print("KERNEL_OK")
</pallas_src>

<mosaic_0001>
module attributes {stable_mosaic.version = 11 : i64} {
  func.func @dqn_kernel(%arg0: i32, %arg1: memref<8x32xf32, #tpu.memory_space<vmem>>, %arg2: memref<32x256xbf16, #tpu.memory_space<vmem>>, %arg3: memref<1x256xf32, #tpu.memory_space<vmem>>, %arg4: memref<256x256xbf16, #tpu.memory_space<vmem>>, %arg5: memref<1x256xf32, #tpu.memory_space<vmem>>, %arg6: memref<256x128xbf16, #tpu.memory_space<vmem>>, %arg7: memref<1x128xf32, #tpu.memory_space<vmem>>, %arg8: memref<8x128xf32, #tpu.memory_space<vmem>>) attributes {dimension_semantics = [#tpu.dimension_semantics<parallel>], iteration_bounds = array<i64: 1>, scalar_prefetch = 0 : i64, scratch_operands = 0 : i64, tpu.core_type = #tpu.core_type<tc>, window_params = [{transform_indices = @transform_0, window_bounds = array<i64: 8, 32>}, {pipeline_mode = #tpu.pipeline_mode<synchronous>, transform_indices = @transform_1, window_bounds = array<i64: 32, 256>}, {pipeline_mode = #tpu.pipeline_mode<synchronous>, transform_indices = @transform_2, window_bounds = array<i64: 1, 256>}, {pipeline_mode = #tpu.pipeline_mode<synchronous>, transform_indices = @transform_3, window_bounds = array<i64: 256, 256>}, {pipeline_mode = #tpu.pipeline_mode<synchronous>, transform_indices = @transform_4, window_bounds = array<i64: 1, 256>}, {pipeline_mode = #tpu.pipeline_mode<synchronous>, transform_indices = @transform_5, window_bounds = array<i64: 256, 128>}, {pipeline_mode = #tpu.pipeline_mode<synchronous>, transform_indices = @transform_6, window_bounds = array<i64: 1, 128>}, {transform_indices = @transform_7, window_bounds = array<i64: 8, 128>}]} {
    %c0 = arith.constant 0 : index
    %c0_0 = arith.constant 0 : index
    %0 = vector.load %arg1[%c0, %c0_0] : memref<8x32xf32, #tpu.memory_space<vmem>>, vector<8x32xf32>
    %1 = arith.truncf %0 : vector<8x32xf32> to vector<8x32xbf16>
    %c0_1 = arith.constant 0 : index
    %c0_2 = arith.constant 0 : index
    %2 = vector.load %arg2[%c0_1, %c0_2] : memref<32x256xbf16, #tpu.memory_space<vmem>>, vector<32x256xbf16>
    %cst = arith.constant dense<0.000000e+00> : vector<8x256xf32>
    %3 = tpu.matmul %1, %2, %cst {dimension_numbers = #tpu.dot_dimension_numbers<[1], [0], [0], [1], [0, 0, 1, 1], [], []>} : vector<8x32xbf16>, vector<32x256xbf16>, vector<8x256xf32> -> vector<8x256xf32>
    %c0_3 = arith.constant 0 : index
    %c0_4 = arith.constant 0 : index
    %4 = vector.load %arg3[%c0_3, %c0_4] : memref<1x256xf32, #tpu.memory_space<vmem>>, vector<1x256xf32>
    %5 = vector.broadcast %4 : vector<1x256xf32> to vector<8x256xf32>
    %6 = arith.addf %3, %5 : vector<8x256xf32>
    %cst_5 = arith.constant 0.000000e+00 : f32
    %7 = vector.broadcast %cst_5 : f32 to vector<8x256xf32>
    %8 = arith.cmpf ogt, %6, %7 : vector<8x256xf32>
    %cst_6 = arith.constant 0.00999999977 : f32
    %9 = vector.broadcast %cst_6 : f32 to vector<8x256xf32>
    %10 = arith.mulf %9, %6 : vector<8x256xf32>
    %11 = arith.select %8, %6, %10 : vector<8x256xi1>, vector<8x256xf32>
    %12 = arith.truncf %11 : vector<8x256xf32> to vector<8x256xbf16>
    %c0_7 = arith.constant 0 : index
    %c0_8 = arith.constant 0 : index
    %13 = vector.load %arg4[%c0_7, %c0_8] : memref<256x256xbf16, #tpu.memory_space<vmem>>, vector<256x256xbf16>
    %cst_9 = arith.constant dense<0.000000e+00> : vector<8x256xf32>
    %14 = tpu.matmul %12, %13, %cst_9 {dimension_numbers = #tpu.dot_dimension_numbers<[1], [0], [0], [1], [0, 0, 1, 1], [], []>} : vector<8x256xbf16>, vector<256x256xbf16>, vector<8x256xf32> -> vector<8x256xf32>
    %c0_10 = arith.constant 0 : index
    %c0_11 = arith.constant 0 : index
    %15 = vector.load %arg5[%c0_10, %c0_11] : memref<1x256xf32, #tpu.memory_space<vmem>>, vector<1x256xf32>
    %16 = vector.broadcast %15 : vector<1x256xf32> to vector<8x256xf32>
    %17 = arith.addf %14, %16 : vector<8x256xf32>
    %cst_12 = arith.constant 0.000000e+00 : f32
    %18 = vector.broadcast %cst_12 : f32 to vector<8x256xf32>
    %19 = arith.cmpf ogt, %17, %18 : vector<8x256xf32>
    %cst_13 = arith.constant 0.00999999977 : f32
    %20 = vector.broadcast %cst_13 : f32 to vector<8x256xf32>
    %21 = arith.mulf %20, %17 : vector<8x256xf32>
    %22 = arith.select %19, %17, %21 : vector<8x256xi1>, vector<8x256xf32>
    %23 = arith.truncf %22 : vector<8x256xf32> to vector<8x256xbf16>
    %c0_14 = arith.constant 0 : index
    %c0_15 = arith.constant 0 : index
    %24 = vector.load %arg6[%c0_14, %c0_15] : memref<256x128xbf16, #tpu.memory_space<vmem>>, vector<256x128xbf16>
    %cst_16 = arith.constant dense<0.000000e+00> : vector<8x128xf32>
    %25 = tpu.matmul %23, %24, %cst_16 {dimension_numbers = #tpu.dot_dimension_numbers<[1], [0], [0], [1], [0, 0, 1, 1], [], []>} : vector<8x256xbf16>, vector<256x128xbf16>, vector<8x128xf32> -> vector<8x128xf32>
    %c0_17 = arith.constant 0 : index
    %c0_18 = arith.constant 0 : index
    %26 = vector.load %arg7[%c0_17, %c0_18] : memref<1x128xf32, #tpu.memory_space<vmem>>, vector<1x128xf32>
    %27 = vector.broadcast %26 : vector<1x128xf32> to vector<8x128xf32>
    %28 = arith.addf %25, %27 : vector<8x128xf32>
    %c0_19 = arith.constant 0 : index
    %c0_20 = arith.constant 0 : index
    %29 = vector.load %arg8[%c0_19, %c0_20] : memref<8x128xf32, #tpu.memory_space<vmem>>, vector<8x128xf32>
    tpu.vector_store %arg8[%c0_19, %c0_20], %28 {strides = array<i32>} : memref<8x128xf32, #tpu.memory_space<vmem>>, vector<8x128xf32>,
    return
  }
  func.func @transform_0(%arg0: i32) -> (i32, i32) {
    %c0_i32 = arith.constant 0 : i32
    %c0_i32_0 = arith.constant 0 : i32
    return %arg0, %c0_i32 : i32, i32
  }
  func.func @transform_1(%arg0: i32) -> (i32, i32) {
    %c0_i32 = arith.constant 0 : i32
    %c0_i32_0 = arith.constant 0 : i32
    %c0_i32_1 = arith.constant 0 : i32
    return %c0_i32, %c0_i32_0 : i32, i32
  }
  func.func @transform_2(%arg0: i32) -> (i32, i32) {
    %c0_i32 = arith.constant 0 : i32
    %c0_i32_0 = arith.constant 0 : i32
    %c0_i32_1 = arith.constant 0 : i32
    return %c0_i32, %c0_i32_0 : i32, i32
  }
  func.func @transform_3(%arg0: i32) -> (i32, i32) {
    %c0_i32 = arith.constant 0 : i32
    %c0_i32_0 = arith.constant 0 : i32
    %c0_i32_1 = arith.constant 0 : i32
    return %c0_i32, %c0_i32_0 : i32, i32
  }
  func.func @transform_4(%arg0: i32) -> (i32, i32) {
    %c0_i32 = arith.constant 0 : i32
    %c0_i32_0 = arith.constant 0 : i32
    %c0_i32_1 = arith.constant 0 : i32
    return %c0_i32, %c0_i32_0 : i32, i32
  }
  func.func @transform_5(%arg0: i32) -> (i32, i32) {
    %c0_i32 = arith.constant 0 : i32
    %c0_i32_0 = arith.constant 0 : i32
    %c0_i32_1 = arith.constant 0 : i32
    return %c0_i32, %c0_i32_0 : i32, i32
  }
  func.func @transform_6(%arg0: i32) -> (i32, i32) {
    %c0_i32 = arith.constant 0 : i32
    %c0_i32_0 = arith.constant 0 : i32
    %c0_i32_1 = arith.constant 0 : i32
    return %c0_i32, %c0_i32_0 : i32, i32
  }
  func.func @transform_7(%arg0: i32) -> (i32, i32) {
    %c0_i32 = arith.constant 0 : i32
    %c0_i32_0 = arith.constant 0 : i32
    return %arg0, %c0_i32 : i32, i32
  }
}

</mosaic_0001>

<bundles_post_ra>
// kernel: dqn_forward.1
= control target key start
LH: loop header
LB: loop body
LE: loop exit
PB: predicated region body
PF: predicated region fallthrough
CT: control target
= control target key end

     0   :  { %12 = vsyncpa [#allocation3], 0  ;;  %s884_s0 = inlined_call_operand.vmem [shape: f32[8,32], index: 0, kind: input, shape index: {}]   ;;  %s885_s1 = inlined_call_operand.hbm [shape: bf16[32,256], index: 1, kind: input, shape index: {}]   ;;  %s886_s2 = inlined_call_operand.vmem [shape: f32[1,256], index: 2, kind: input, shape index: {}]   ;;  %s887_s3 = inlined_call_operand.hbm [shape: bf16[256,256], index: 3, kind: input, shape index: {}]   ;;  %s888_s4 = inlined_call_operand.vmem [shape: f32[1,256], index: 4, kind: input, shape index: {}]   ;;  %s889_s5 = inlined_call_operand.hbm [shape: bf16[256,128], index: 5, kind: input, shape index: {}]   ;;  %s890_s6 = inlined_call_operand.vmem [shape: f32[1,128], index: 6, kind: input, shape index: {}]   ;;  %s891_s7 = inlined_call_operand.vmem [shape: f32[8,128], index: 7, kind: output, shape index: {}]  }
   0x1   :  { %13 = vsyncpa [#allocation5], 0  ;;  %s812_s24 = smov [#allocation4]   ;;  %s813_s26 = smov [#allocation2]  }
   0x2   :  { %s35_s25 = sshll.u32 %s812_s24, 4  ;;  %s21_s27 = sshll.u32 %s813_s26, 4  ;;  %s36_s25 = int_to_ptr.vmem [resolvable:$true] %s35_s25  ;;  %s22_s27 = int_to_ptr.vmem [resolvable:$true] %s21_s27 }
   0x3   :  { %s756_s28 = scalar_lea.vmem %s36_s25, 4096  ;;  %p761_p1 = scmp.lt.s32.totalorder %s36_s25, %s36_s25 }
   0x4   :  { %p757_p0 = scmp.ne.s32.totalorder %s36_s25, %s756_s28  ;;  %p762_p2 = scmp.lt.s32.totalorder %s756_s28, %s756_s28 }
   0x6   :  { %p763_p3 = por %p762_p2, %p761_p1 }
   0x8   :  { %p764_p4 = pnand %p763_p3, %p757_p0 }
   0xa   :  { %767 = shalt.err (!%p764_p4)
}
   0xb   :  { %s814_s29 = smov 128   ;;  %s815_s30 = smov 8  }
   0xc   :  { %41 = dma.hbm_to_vmem [thread:$0]  %s887_s3, 4096, %s36_s25, [#allocation5], %s814_s29, %s814_s29, %s815_s30  }
   0xd   :  { %s776_s10 = scalar_lea.vmem %s22_s27, 512  ;;  %p781_p6 = scmp.lt.s32.totalorder %s22_s27, %s22_s27 }
   0xe   :  { %p777_p5 = scmp.ne.s32.totalorder %s22_s27, %s776_s10  ;;  %p782_p7 = scmp.lt.s32.totalorder %s776_s10, %s776_s10 }
  0x10   :  { %p783_p8 = por %p782_p7, %p781_p6 }
  0x12   :  { %p784_p9 = pnand %p783_p8, %p777_p5 }
  0x14   :  { %787 = shalt.err (!%p784_p9)
}
  0x15   :  { %27 = dma.hbm_to_vmem [thread:$0]  %s885_s1, 512, %s22_s27, [#allocation3], %s814_s29, %s814_s29, %s815_s30  }
  0x16   :  { %s816_s13 = smov [#allocation6]  }
  0x17   :  { %s49_s14 = sshll.u32 %s816_s13, 4  ;;  %s50_s14 = int_to_ptr.vmem [resolvable:$true] %s49_s14 }
  0x18   :  { %s796_s15 = scalar_lea.vmem %s50_s14, 2048  ;;  %p801_p11 = scmp.lt.s32.totalorder %s50_s14, %s50_s14 }
  0x19   :  { %p797_p10 = scmp.ne.s32.totalorder %s50_s14, %s796_s15  ;;  %p802_p12 = scmp.lt.s32.totalorder %s796_s15, %s796_s15 }
  0x1b   :  { %p803_p13 = por %p802_p12, %p801_p11 }
  0x1d   :  { %p804_p0 = pnand %p803_p13, %p797_p10 }
  0x1f   :  { %807 = shalt.err (!%p804_p0)
}
  0x20   :  { %s817_s3 = smov 64   ;;  %s818_s16 = smov 4  }
  0x21   :  { %55 = dma.hbm_to_vmem [thread:$0]  %s889_s5, 2048, %s50_s14, [#allocation5], %s817_s3, %s817_s3, %s818_s16  }
  0x22   :  { %808 = dma.done.wait [#allocation3], 512  }
  0x23   :  { %809 = vsyncadd [#allocation3], 4294966784 }
  0x24   :  { %810 = dma.done.wait [#allocation5], 6144  }
  0x25   :  { %811 = vsyncadd [#allocation5], 4294961152  ;;  %v819_v0 = vmov 0   ;;  %v678_v1 = vld [vmem:[#allocation2 + $0x14] ss:$8 sps:$4 sm:$0xff]   ;;  %v68_v5 = vld [vmem:[%s884_s0] sm:$0xff]  ;;  %v76_v50 = vlaneseq }
  0x26   :  { %142 = vmatprep.mubr.bf16.mxu0 %v819_v0  ;;  %v680_v2 = vld [vmem:[#allocation2 + $0x10] ss:$8 sps:$4 sm:$0xff]   ;;  %122 = vmatprep.subr.bf16.mxu0 %v678_v1  ;;  %v681_v3 = vld [vmem:[#allocation2 + $0x4] ss:$8 sps:$4 sm:$0xff]   ;;  %v683_v4 = vld [vmem:[#allocation2] ss:$8 sps:$4 sm:$0xff]   ;;  %v69_v9 = vpack.c.bf16 %v68_v5, %v68_v5 }
  0x27   :  { %123 = vmatpush1.bf16.msra.mxu0 %v680_v2  ;;  %v684_v6 = vld [vmem:[#allocation4 + $0x74] ss:$8 sps:$4 sm:$0xff]   ;;  %v686_v7 = vld [vmem:[#allocation4 + $0x70] ss:$8 sps:$4 sm:$0xff]   ;;  %v687_v8 = vld [vmem:[#allocation4 + $0x64] ss:$8 sps:$4 sm:$0xff]  }
  0x28   :  { %124 = vmatprep.subr.bf16.mxu0 %v681_v3  ;;  %363 = vmatprep.subr.bf16.mxu1 %v684_v6  ;;  %v689_v10 = vld [vmem:[#allocation4 + $0x60] ss:$8 sps:$4 sm:$0xff]   ;;  %vm106_vm0 = vcmask 261120   ;;  %v690_v11 = vld [vmem:[#allocation4 + $0x54] ss:$8 sps:$4 sm:$0xff]   ;;  %v77_v51 = vshrl.u32 %v76_v50, 7 }
  0x29   :  { %364 = vmatpush1.bf16.msra.mxu1 %v686_v7  ;;  %v692_v12 = vld [vmem:[#allocation4 + $0x50] ss:$8 sps:$4 sm:$0xff]   ;;  %v693_v13 = vld [vmem:[#allocation4 + $0x44] ss:$8 sps:$4 sm:$0xff]   ;;  %v695_v14 = vld [vmem:[#allocation4 + $0x40] ss:$8 sps:$4 sm:$0xff]  }
  0x2a   :  { %365 = vmatprep.subr.bf16.mxu1 %v687_v8  ;;  %v696_v15 = vld [vmem:[#allocation4 + $0x34] ss:$8 sps:$4 sm:$0xff]   ;;  %v698_v16 = vld [vmem:[#allocation4 + $0x30] ss:$8 sps:$4 sm:$0xff]   ;;  %v699_v17 = vld [vmem:[#allocation4 + $0x24] ss:$8 sps:$4 sm:$0xff]  }
  0x2b   :  { %125 = vmatpush1.bf16.msra.mxu0 %v683_v4  ;;  %v701_v18 = vld [vmem:[#allocation4 + $0x20] ss:$8 sps:$4 sm:$0xff]   ;;  %v702_v19 = vld [vmem:[#allocation4 + $0x14] ss:$8 sps:$4 sm:$0xff]   ;;  %v704_v20 = vld [vmem:[#allocation4 + $0x10] ss:$8 sps:$4 sm:$0xff]  }
  0x2c   :  { %v705_v21 = vld [vmem:[#allocation4 + $0x4] ss:$8 sps:$4 sm:$0xff]   ;;  %v707_v22 = vld [vmem:[#allocation4] ss:$8 sps:$4 sm:$0xff]   ;;  %v708_v23 = vld [vmem:[#allocation4 + $0xf4] ss:$8 sps:$4 sm:$0xff]  }
  0x2d   :  { %366 = vmatpush1.bf16.msra.mxu1 %v689_v10  ;;  %v710_v24 = vld [vmem:[#allocation4 + $0xf0] ss:$8 sps:$4 sm:$0xff]   ;;  %v711_v25 = vld [vmem:[#allocation4 + $0xe4] ss:$8 sps:$4 sm:$0xff]   ;;  %v713_v26 = vld [vmem:[#allocation4 + $0xe0] ss:$8 sps:$4 sm:$0xff]  }
  0x2e   :  { %598 = vmatmul.mubr.msk.bf16.vlgmr.msra.gmra.mxu0 %vm106_vm0, %v69_v9  ;;  %367 = vmatprep.subr.bf16.mxu1 %v690_v11  ;;  %v714_v27 = vld [vmem:[#allocation4 + $0xd4] ss:$8 sps:$4 sm:$0xff]   ;;  %v716_v28 = vld [vmem:[#allocation4 + $0xd0] ss:$8 sps:$4 sm:$0xff]   ;;  %v717_v29 = vld [vmem:[#allocation4 + $0xc4] ss:$8 sps:$4 sm:$0xff]  }
  0x2f   :  { %v719_v30 = vld [vmem:[#allocation4 + $0xc0] ss:$8 sps:$4 sm:$0xff]   ;;  %v720_v31 = vld [vmem:[#allocation4 + $0xb4] ss:$8 sps:$4 sm:$0xff]   ;;  %v722_v32 = vld [vmem:[#allocation4 + $0xb0] ss:$8 sps:$4 sm:$0xff]  }
  0x30   :  { %v723_v33 = vld [vmem:[#allocation4 + $0xa4] ss:$8 sps:$4 sm:$0xff]   ;;  %v725_v34 = vld [vmem:[#allocation4 + $0xa0] ss:$8 sps:$4 sm:$0xff]   ;;  %v726_v35 = vld [vmem:[#allocation4 + $0x94] ss:$8 sps:$4 sm:$0xff]  }
  0x31   :  { %368 = vmatpush1.bf16.msra.mxu1 %v692_v12  ;;  %v728_v36 = vld [vmem:[#allocation4 + $0x90] ss:$8 sps:$4 sm:$0xff]   ;;  %v729_v37 = vld [vmem:[#allocation4 + $0x84] ss:$8 sps:$4 sm:$0xff]   ;;  %v731_v38 = vld [vmem:[#allocation4 + $0x80] ss:$8 sps:$4 sm:$0xff]  }
  0x32   :  { %369 = vmatprep.subr.bf16.mxu1 %v693_v13  ;;  %v732_v39 = vld [vmem:[#allocation6 + $0x78] sm:$0xff]   ;;  %v734_v41 = vld [vmem:[#allocation6 + $0x70] sm:$0xff]   ;;  %v736_v43 = vld [vmem:[#allocation6 + $0x68] sm:$0xff]   ;;  %v78_v52 = vsub.s32 0, %v77_v51  ;;  %v82_v54 = vsub.s32 1, %v77_v51 }
  0x33   :  { %v733_v40 = vld [vmem:[#allocation6 + $0x38] sm:$0xff]   ;;  %648 = vmatprep.subr.bf16.mxu0 %v732_v39  ;;  %v735_v42 = vld [vmem:[#allocation6 + $0x30] sm:$0xff]   ;;  %v737_v44 = vld [vmem:[#allocation6 + $0x28] sm:$0xff]  }
  0x34   :  { %649 = vmatpush3.bf16.msra.mxu0 %v733_v40  ;;  %v738_v45 = vld [vmem:[#allocation6 + $0x60] sm:$0xff]   ;;  %v740_v47 = vld [vmem:[#allocation6 + $0x58] sm:$0xff]   ;;  %v742_v49 = vld [vmem:[#allocation6 + $0x50] sm:$0xff]  }
  0x35   :  { %370 = vmatpush1.bf16.msra.mxu1 %v695_v14  ;;  %650 = vmatprep.subr.bf16.mxu0 %v734_v41  ;;  %v739_v46 = vld [vmem:[#allocation6 + $0x20] sm:$0xff]   ;;  %v741_v48 = vld [vmem:[#allocation6 + $0x18] sm:$0xff]   ;;  %v743_v5 = vld [vmem:[#allocation6 + $0x10] sm:$0xff]  }
  0x36   :  { %371 = vmatprep.subr.bf16.mxu1 %v696_v15  ;;  %v74_v53 = vld [vmem:[%s886_s2] sm:$0x3]  ;;  %v744_v6 = vld [vmem:[#allocation6 + $0x48] sm:$0xff]  }
  0x37   :  { %v79_v55 = vrot.slane %v74_v53, %v78_v52  ;;  %v83_v56 = vrot.slane %v74_v53, %v82_v54  ;;  %v745_v7 = vld [vmem:[#allocation6 + $0x8] sm:$0xff]   ;;  %v746_v8 = vld [vmem:[#allocation6 + $0x40] sm:$0xff]  }
  0x38   :  { %651 = vmatpush3.bf16.msra.mxu0 %v735_v42  ;;  %v747_v9 = vld [vmem:[#allocation6] sm:$0xff]  }
  0x39   :  { %372 = vmatpush1.bf16.msra.mxu1 %v698_v16  ;;  %652 = vmatprep.subr.bf16.mxu0 %v736_v43  ;;  %v191_v10 = vld [vmem:[%s888_s4] sm:$0x3] }
  0x3a   :  { %373 = vmatprep.subr.bf16.mxu1 %v699_v17  ;;  %v196_v11 = vrot.slane %v191_v10, %v78_v52  ;;  %v200_v12 = vrot.slane %v191_v10, %v82_v54 }
  0x3c   :  { %653 = vmatpush3.bf16.msra.mxu0 %v737_v44 }
  0x3d   :  { %374 = vmatpush1.bf16.msra.mxu1 %v701_v18  ;;  %654 = vmatprep.subr.bf16.mxu0 %v738_v45 }
  0x3e   :  { %375 = vmatprep.subr.bf16.mxu1 %v702_v19 }
  0x40   :  { %655 = vmatpush3.bf16.msra.mxu0 %v739_v46 }
  0x41   :  { %376 = vmatpush1.bf16.msra.mxu1 %v704_v20  ;;  %656 = vmatprep.subr.bf16.mxu0 %v740_v47 }
  0x42   :  { %377 = vmatprep.subr.bf16.mxu1 %v705_v21 }
  0x44   :  { %657 = vmatpush3.bf16.msra.mxu0 %v741_v48 }
  0x45   :  { %378 = vmatpush1.bf16.msra.mxu1 %v707_v22  ;;  %658 = vmatprep.subr.bf16.mxu0 %v742_v49 }
  0x46   :  { %379 = vmatprep.subr.bf16.mxu1 %v708_v23 }
  0x48   :  { %659 = vmatpush3.bf16.msra.mxu0 %v743_v5 }
  0x49   :  { %380 = vmatpush2.bf16.msra.mxu1 %v710_v24  ;;  %660 = vmatprep.subr.bf16.mxu0 %v744_v6 }
  0x4a   :  { %381 = vmatprep.subr.bf16.mxu1 %v711_v25 }
  0x4c   :  { %661 = vmatpush3.bf16.msra.mxu0 %v745_v7 }
  0x4d   :  { %382 = vmatpush2.bf16.msra.mxu1 %v713_v26  ;;  %662 = vmatprep.subr.bf16.mxu0 %v746_v8  ;;  %v631_v26 = vld [vmem:[%s890_s6] ss:$0 sm:$0xff] }
  0x4e   :  { %383 = vmatprep.subr.bf16.mxu1 %v714_v27 }
  0x50   :  { %663 = vmatpush3.bf16.msra.mxu0 %v747_v9 }
  0x51   :  { %384 = vmatpush2.bf16.msra.mxu1 %v716_v28 }
  0x52   :  { %385 = vmatprep.subr.bf16.mxu1 %v717_v29 }
  0x55   :  { %386 = vmatpush2.bf16.msra.mxu1 %v719_v30 }
  0x56   :  { %387 = vmatprep.subr.bf16.mxu1 %v720_v31 }
  0x59   :  { %388 = vmatpush2.bf16.msra.mxu1 %v722_v32 }
  0x5a   :  { %389 = vmatprep.subr.bf16.mxu1 %v723_v33 }
  0x5d   :  { %390 = vmatpush2.bf16.msra.mxu1 %v725_v34 }
  0x5e   :  { %391 = vmatprep.subr.bf16.mxu1 %v726_v35 }
  0x61   :  { %392 = vmatpush2.bf16.msra.mxu1 %v728_v36 }
  0x62   :  { %393 = vmatprep.subr.bf16.mxu1 %v729_v37 }
  0x65   :  { %394 = vmatpush2.bf16.msra.mxu1 %v731_v38 }
  0xee   :  { %v144_v57 = vpop.f32.mrf.mxu0 }
  0xef   :  { %v145_v58 = vadd.f32 %v144_v57, %v79_v55 }
  0xf0   :  { %v146_v59 = vpop.f32.mrf.mxu0 }
  0xf1   :  { %vm151_vm1 = vcmp.gt.f32.partialorder %v145_v58, 0.0  ;;  %v153_v60 = vmul.f32 0.01, %v145_v58  ;;  %v147_v61 = vadd.f32 %v146_v59, %v83_v56 }
  0xf2   :  { %v148_v62 = vpop.f32.mrf.mxu0 }
  0xf3   :  { %vm152_vm2 = vcmp.gt.f32.partialorder %v147_v61, 0.0  ;;  %v154_v63 = vmul.f32 0.01, %v147_v61  ;;  %v155_v1 = vsel %vm151_vm1, %v145_v58, %v153_v60 }
  0xf4   :  { %v149_v0 = vpop.f32.mrf.mxu0  ;;  %v157_v4 = vpack.c.bf16 %v155_v1, %v155_v1 }
  0xf5   :  { %v156_v2 = vsel %vm152_vm2, %v147_v61, %v154_v63 }
  0xf6   :  { %v158_v3 = vpack.c.bf16 %v156_v2, %v156_v2 }
  0xf8   :  { %395 = vmatprep.mubr.bf16.mxu1 %v158_v3 }
  0xf9   :  { %396 = vmatmul.mubr.bf16.vlgmr.msra.gmra.mxu1 %v157_v4 }
 0x1b9   :  { %v397_v13 = vpop.f32.mrf.mxu1 }
 0x1ba   :  { %v398_v14 = vadd.f32 %v397_v13, %v196_v11 }
 0x1bb   :  { %v399_v15 = vpop.f32.mrf.mxu1 }
 0x1bc   :  { %vm404_vm3 = vcmp.gt.f32.partialorder %v398_v14, 0.0  ;;  %v406_v16 = vmul.f32 0.01, %v398_v14  ;;  %v400_v17 = vadd.f32 %v399_v15, %v200_v12 }
 0x1bd   :  { %v401_v18 = vpop.f32.mrf.mxu1 }
 0x1be   :  { %vm405_vm4 = vcmp.gt.f32.partialorder %v400_v17, 0.0  ;;  %v407_v19 = vmul.f32 0.01, %v400_v17  ;;  %v408_v20 = vsel %vm404_vm3, %v398_v14, %v406_v16 }
 0x1bf   :  { %v402_v21 = vpop.f32.mrf.mxu1  ;;  %v410_v24 = vpack.c.bf16 %v408_v20, %v408_v20 }
 0x1c0   :  { %v409_v22 = vsel %vm405_vm4, %v400_v17, %v407_v19 }
 0x1c1   :  { %v411_v23 = vpack.c.bf16 %v409_v22, %v409_v22 }
 0x1c3   :  { %579 = vmatprep.mubr.bf16.mxu0 %v411_v23 }
 0x1c4   :  { %580 = vmatmul.mubr.bf16.vlgmr.msra.gmra.mxu0 %v410_v24 }
 0x284   :  { %v664_v25 = vpop.f32.mrf.mxu0 }
 0x286   :  { %v665_v27 = vpop.f32.mrf.mxu0 }
 0x287   :  { %v666_v28 = vadd.f32 %v665_v27, %v664_v25 }
 0x288   :  { %v667_v29 = vpop.f32.mrf.mxu0 }
 0x289   :  { %v582_v30 = vadd.f32 %v666_v28, %v631_v26 }
 0x28a   :  { %v668_v31 = vpop.f32.mrf.mxu0 }
 0x28b   :  { %587 = vst [vmem:[%s891_s7] sm:$0xff] %v582_v30 }
 0x28c   :  { %592 = vsyncpa [#allocation3], 1 }
 0x28d   :  { %593 = vsyncpa [#allocation5], 1 }

</bundles_post_ra>
